<compile_context>
chip_gen: v7x
topology: tpu7x:2x2x1
jax: 0.10.0
libtpu: 0.0.40
codegen_flags: <defaults>
</compile_context>

<pallas_src>
import jax
import jax.numpy as jnp
from jax import lax
from jax.experimental import pallas as pl
from jax.experimental.pallas import tpu as pltpu

BN_EPS = 1e-5
LANE = 128


def _round_up(x, m):
    return -(-x // m) * m


def _pick_tile_rows(pout, cin_p, cout_p, *, budget_bytes=24 << 20, max_rows=1024):
    """Largest multiple-of-8 pooled-pixel tile that keeps the pipelined VMEM
    footprint (double-buffered input taps + output, resident weight) in budget."""
    fixed = 2 * cin_p * cout_p * 4                      # weight (dbl-buffered)
    per_row = (2 * 4 * cin_p + 2 * cout_p) * 4          # x taps + out (dbl-buffered)
    tp = max(8, (budget_bytes - fixed) // per_row)
    tp = min(tp, max_rows, _round_up(pout, 8))
    return max(8, (tp // 8) * 8)


def _transition_kernel(x_ref, scale_ref, shift_ref, w_ref, b_ref, o_ref):
    # x_ref:       (4, TP, Cin_p)  the 4 taps of each 2x2 pooling window
    # scale/shift: (1, Cin_p)      folded BatchNorm affine
    # w_ref:       (Cin_p, Cout_p) 1x1 conv weight (transposed, pre-scaled by 1/4)
    # b_ref:       (1, Cout_p)     conv bias
    # o_ref:       (TP, Cout_p)    pooled-pixel x out-channel output tile
    scale = scale_ref[...]
    shift = shift_ref[...]

    def bn_relu(k):
        return jnp.maximum(x_ref[k] * scale + shift, 0.0)

    # AvgPool2d(2,2) as a 4-tap VPU sum; the 1/4 factor lives in w_ref, and the
    # pool is commuted ahead of the 1x1 conv (exact since both are linear),
    # shrinking the matmul LHS 4x.
    pooled = (bn_relu(0) + bn_relu(1)) + (bn_relu(2) + bn_relu(3))

    # 1x1 conv == per-pixel matmul over channels (MXU), bias fused.
    o_ref[...] = (
        jnp.dot(pooled, w_ref[...], preferred_element_type=jnp.float32)
        + b_ref[...]
    )


def transition_layer(x_nchw, gamma, beta, conv_w, conv_b, *, max_tile_rows=1024):
    """x_nchw: (N, Cin, H, W) f32.  Returns (N, Cout, H//2, W//2) f32."""
    N, Cin, H, W = x_nchw.shape
    Cout = conv_w.shape[0]
    Hp, Wp = H // 2, W // 2
    Pout = N * Hp * Wp

    Cin_p = _round_up(Cin, LANE)
    Cout_p = _round_up(Cout, LANE)
    tp = _pick_tile_rows(Pout, Cin_p, Cout_p, max_rows=max_tile_rows)
    Pout_p = _round_up(Pout, tp)

    # --- BatchNorm2d statistics (training mode: batch stats, biased variance),
    # folded into a single per-channel scale/shift so the tiled kernel stays
    # exact.  (Eval-mode would simply pass running_mean/running_var here.)
    xf = x_nchw.astype(jnp.float32)
    mean = jnp.mean(xf, axis=(0, 2, 3))
    var = jnp.mean(jnp.square(xf - mean[None, :, None, None]), axis=(0, 2, 3))
    scale = gamma * lax.rsqrt(var + BN_EPS)
    shift = beta - mean * scale

    # --- Layout glue: NCHW -> (4, Pout, Cin).  The 4 taps of every 2x2 window
    # become the leading axis so the pool is a stride-free add inside the
    # kernel (no in-kernel reshapes/gathers).
    x_nhwc = jnp.transpose(xf, (0, 2, 3, 1))                      # (N,H,W,Cin)
    x_win = x_nhwc.reshape(N, Hp, 2, Wp, 2, Cin)
    x_g = jnp.transpose(x_win, (2, 4, 0, 1, 3, 5)).reshape(4, Pout, Cin)

    # --- Lane-dense padding (no-op once channels are multiples of 128).
    x_g = jnp.pad(x_g, ((0, 0), (0, Pout_p - Pout), (0, Cin_p - Cin)))
    scale_p = jnp.pad(scale, (0, Cin_p - Cin)).reshape(1, Cin_p)
    shift_p = jnp.pad(shift, (0, Cin_p - Cin)).reshape(1, Cin_p)
    # 1/4 pooling factor folded into the conv weight (pool commuted ahead of conv).
    w_p = 0.25 * jnp.pad(
        conv_w[:, :, 0, 0].T, ((0, Cin_p - Cin), (0, Cout_p - Cout))
    )
    b_p = jnp.pad(conv_b, (0, Cout_p - Cout)).reshape(1, Cout_p)

    out_p = pl.pallas_call(
        _transition_kernel,
        out_shape=jax.ShapeDtypeStruct((Pout_p, Cout_p), jnp.float32),
        grid_spec=pltpu.PrefetchScalarGridSpec(
            num_scalar_prefetch=0,
            grid=(Pout_p // tp,),
            in_specs=[
                pl.BlockSpec((4, tp, Cin_p), lambda i: (0, i, 0)),
                pl.BlockSpec((1, Cin_p), lambda i: (0, 0)),
                pl.BlockSpec((1, Cin_p), lambda i: (0, 0)),
                pl.BlockSpec((Cin_p, Cout_p), lambda i: (0, 0)),
                pl.BlockSpec((1, Cout_p), lambda i: (0, 0)),
            ],
            out_specs=pl.BlockSpec((tp, Cout_p), lambda i: (i, 0)),
        ),
        compiler_params=pltpu.CompilerParams(
            dimension_semantics=("parallel",),
            vmem_limit_bytes=32 << 20,
        ),
    )(x_g, scale_p, shift_p, w_p, b_p)

    # --- Glue back: (Pout, Cout) -> (N, Hp, Wp, Cout) -> NCHW.
    out = out_p[:Pout, :Cout].reshape(N, Hp, Wp, Cout)
    return jnp.transpose(out, (0, 3, 1, 2))


def _reference(x_nchw, gamma, beta, conv_w, conv_b):
    # Pure-JAX reference mirroring the PyTorch forward (training-mode BN).
    mean = jnp.mean(x_nchw, axis=(0, 2, 3), keepdims=True)
    var = jnp.mean((x_nchw - mean) ** 2, axis=(0, 2, 3), keepdims=True)
    y = (x_nchw - mean) * lax.rsqrt(var + BN_EPS)
    y = y * gamma[None, :, None, None] + beta[None, :, None, None]
    y = jnp.maximum(y, 0.0)
    z = jnp.einsum("nihw,oi->nohw", y, conv_w[:, :, 0, 0]) + conv_b[None, :, None, None]
    N, Co, H, W = z.shape
    return z.reshape(N, Co, H // 2, 2, W // 2, 2).mean(axis=(3, 5))


if __name__ == "__main__":
    N, Cin, Cout, H, W = 2, 4, 8, 16, 16

    key = jax.random.PRNGKey(0)
    kx, kg, kb, kw, kbias = jax.random.split(key, 5)

    x = jax.random.normal(kx, (N, Cin, H, W), jnp.float32)
    # BatchNorm2d affine params (default init weight=1, bias=0; perturb so the
    # affine path is exercised).
    gamma = jnp.ones((Cin,), jnp.float32) + 0.1 * jax.random.normal(kg, (Cin,))
    beta = 0.1 * jax.random.normal(kb, (Cin,), jnp.float32)
    # Conv2d(in, out, kernel=1) weight (Cout, Cin, 1, 1) + bias (Cout,)
    conv_w = 0.2 * jax.random.normal(kw, (Cout, Cin, 1, 1), jnp.float32)
    conv_b = 0.1 * jax.random.normal(kbias, (Cout,), jnp.float32)

    out = transition_layer(x, gamma, beta, conv_w, conv_b)
    out = jax.block_until_ready(out)

    ref = _reference(x, gamma, beta, conv_w, conv_b)
    assert out.shape == (N, Cout, H // 2, W // 2), out.shape
    assert jnp.allclose(out, ref, atol=1e-4, rtol=1e-4), float(
        jnp.max(jnp.abs(out - ref))
    )

    print("KERNEL_OK")
</pallas_src>

<mosaic_0001>
module attributes {stable_mosaic.version = 11 : i64} {
  func.func @_transition_kernel(%arg0: i32, %arg1: memref<4x128x128xf32, #tpu.memory_space<vmem>>, %arg2: memref<1x128xf32, #tpu.memory_space<vmem>>, %arg3: memref<1x128xf32, #tpu.memory_space<vmem>>, %arg4: memref<128x128xf32, #tpu.memory_space<vmem>>, %arg5: memref<1x128xf32, #tpu.memory_space<vmem>>, %arg6: memref<128x128xf32, #tpu.memory_space<vmem>>) attributes {dimension_semantics = [#tpu.dimension_semantics<parallel>], iteration_bounds = array<i64: 1>, scalar_prefetch = 0 : i64, scratch_operands = 0 : i64, tpu.core_type = #tpu.core_type<tc>, window_params = [{transform_indices = @transform_0, window_bounds = array<i64: 4, 128, 128>}, {pipeline_mode = #tpu.pipeline_mode<synchronous>, transform_indices = @transform_1, window_bounds = array<i64: 1, 128>}, {pipeline_mode = #tpu.pipeline_mode<synchronous>, transform_indices = @transform_2, window_bounds = array<i64: 1, 128>}, {pipeline_mode = #tpu.pipeline_mode<synchronous>, transform_indices = @transform_3, window_bounds = array<i64: 128, 128>}, {pipeline_mode = #tpu.pipeline_mode<synchronous>, transform_indices = @transform_4, window_bounds = array<i64: 1, 128>}, {transform_indices = @transform_5, window_bounds = array<i64: 128, 128>}]} {
    %c0 = arith.constant 0 : index
    %c0_0 = arith.constant 0 : index
    %0 = vector.load %arg2[%c0, %c0_0] : memref<1x128xf32, #tpu.memory_space<vmem>>, vector<1x128xf32>
    %c0_1 = arith.constant 0 : index
    %c0_2 = arith.constant 0 : index
    %1 = vector.load %arg3[%c0_1, %c0_2] : memref<1x128xf32, #tpu.memory_space<vmem>>, vector<1x128xf32>
    %c0_3 = arith.constant 0 : index
    %c0_4 = arith.constant 0 : index
    %c0_5 = arith.constant 0 : index
    %2 = vector.load %arg1[%c0_3, %c0_4, %c0_5] : memref<4x128x128xf32, #tpu.memory_space<vmem>>, vector<1x128x128xf32>
    %3 = vector.shape_cast %2 : vector<1x128x128xf32> to vector<128x128xf32>
    %4 = vector.broadcast %0 : vector<1x128xf32> to vector<128x128xf32>
    %5 = arith.mulf %3, %4 : vector<128x128xf32>
    %6 = vector.broadcast %1 : vector<1x128xf32> to vector<128x128xf32>
    %7 = arith.addf %5, %6 : vector<128x128xf32>
    %cst = arith.constant 0.000000e+00 : f32
    %8 = vector.broadcast %cst : f32 to vector<128x128xf32>
    %9 = arith.maximumf %7, %8 : vector<128x128xf32>
    %c1 = arith.constant 1 : index
    %c0_6 = arith.constant 0 : index
    %c0_7 = arith.constant 0 : index
    %10 = vector.load %arg1[%c1, %c0_6, %c0_7] : memref<4x128x128xf32, #tpu.memory_space<vmem>>, vector<1x128x128xf32>
    %11 = vector.shape_cast %10 : vector<1x128x128xf32> to vector<128x128xf32>
    %12 = vector.broadcast %0 : vector<1x128xf32> to vector<128x128xf32>
    %13 = arith.mulf %11, %12 : vector<128x128xf32>
    %14 = vector.broadcast %1 : vector<1x128xf32> to vector<128x128xf32>
    %15 = arith.addf %13, %14 : vector<128x128xf32>
    %cst_8 = arith.constant 0.000000e+00 : f32
    %16 = vector.broadcast %cst_8 : f32 to vector<128x128xf32>
    %17 = arith.maximumf %15, %16 : vector<128x128xf32>
    %18 = arith.addf %9, %17 : vector<128x128xf32>
    %c2 = arith.constant 2 : index
    %c0_9 = arith.constant 0 : index
    %c0_10 = arith.constant 0 : index
    %19 = vector.load %arg1[%c2, %c0_9, %c0_10] : memref<4x128x128xf32, #tpu.memory_space<vmem>>, vector<1x128x128xf32>
    %20 = vector.shape_cast %19 : vector<1x128x128xf32> to vector<128x128xf32>
    %21 = vector.broadcast %0 : vector<1x128xf32> to vector<128x128xf32>
    %22 = arith.mulf %20, %21 : vector<128x128xf32>
    %23 = vector.broadcast %1 : vector<1x128xf32> to vector<128x128xf32>
    %24 = arith.addf %22, %23 : vector<128x128xf32>
    %cst_11 = arith.constant 0.000000e+00 : f32
    %25 = vector.broadcast %cst_11 : f32 to vector<128x128xf32>
    %26 = arith.maximumf %24, %25 : vector<128x128xf32>
    %c3 = arith.constant 3 : index
    %c0_12 = arith.constant 0 : index
    %c0_13 = arith.constant 0 : index
    %27 = vector.load %arg1[%c3, %c0_12, %c0_13] : memref<4x128x128xf32, #tpu.memory_space<vmem>>, vector<1x128x128xf32>
    %28 = vector.shape_cast %27 : vector<1x128x128xf32> to vector<128x128xf32>
    %29 = vector.broadcast %0 : vector<1x128xf32> to vector<128x128xf32>
    %30 = arith.mulf %28, %29 : vector<128x128xf32>
    %31 = vector.broadcast %1 : vector<1x128xf32> to vector<128x128xf32>
    %32 = arith.addf %30, %31 : vector<128x128xf32>
    %cst_14 = arith.constant 0.000000e+00 : f32
    %33 = vector.broadcast %cst_14 : f32 to vector<128x128xf32>
    %34 = arith.maximumf %32, %33 : vector<128x128xf32>
    %35 = arith.addf %26, %34 : vector<128x128xf32>
    %36 = arith.addf %18, %35 : vector<128x128xf32>
    %c0_15 = arith.constant 0 : index
    %c0_16 = arith.constant 0 : index
    %37 = vector.load %arg4[%c0_15, %c0_16] : memref<128x128xf32, #tpu.memory_space<vmem>>, vector<128x128xf32>
    %cst_17 = arith.constant dense<0.000000e+00> : vector<128x128xf32>
    %38 = tpu.matmul %36, %37, %cst_17 {dimension_numbers = #tpu.dot_dimension_numbers<[1], [0], [0], [1], [0, 0, 1, 1], [], []>} : vector<128x128xf32>, vector<128x128xf32>, vector<128x128xf32> -> vector<128x128xf32>
    %c0_18 = arith.constant 0 : index
    %c0_19 = arith.constant 0 : index
    %39 = vector.load %arg5[%c0_18, %c0_19] : memref<1x128xf32, #tpu.memory_space<vmem>>, vector<1x128xf32>
    %40 = vector.broadcast %39 : vector<1x128xf32> to vector<128x128xf32>
    %41 = arith.addf %38, %40 : vector<128x128xf32>
    %c0_20 = arith.constant 0 : index
    %c0_21 = arith.constant 0 : index
    %42 = vector.load %arg6[%c0_20, %c0_21] : memref<128x128xf32, #tpu.memory_space<vmem>>, vector<128x128xf32>
    tpu.vector_store %arg6[%c0_20, %c0_21], %41 {strides = array<i32>} : memref<128x128xf32, #tpu.memory_space<vmem>>, vector<128x128xf32>,
    return
  }
  func.func @transform_0(%arg0: i32) -> (i32, i32, i32) {
    %c0_i32 = arith.constant 0 : i32
    %c0_i32_0 = arith.constant 0 : i32
    %c0_i32_1 = arith.constant 0 : i32
    return %c0_i32, %arg0, %c0_i32_0 : i32, i32, i32
  }
  func.func @transform_1(%arg0: i32) -> (i32, i32) {
    %c0_i32 = arith.constant 0 : i32
    %c0_i32_0 = arith.constant 0 : i32
    %c0_i32_1 = arith.constant 0 : i32
    return %c0_i32, %c0_i32_0 : i32, i32
  }
  func.func @transform_2(%arg0: i32) -> (i32, i32) {
    %c0_i32 = arith.constant 0 : i32
    %c0_i32_0 = arith.constant 0 : i32
    %c0_i32_1 = arith.constant 0 : i32
    return %c0_i32, %c0_i32_0 : i32, i32
  }
  func.func @transform_3(%arg0: i32) -> (i32, i32) {
    %c0_i32 = arith.constant 0 : i32
    %c0_i32_0 = arith.constant 0 : i32
    %c0_i32_1 = arith.constant 0 : i32
    return %c0_i32, %c0_i32_0 : i32, i32
  }
  func.func @transform_4(%arg0: i32) -> (i32, i32) {
    %c0_i32 = arith.constant 0 : i32
    %c0_i32_0 = arith.constant 0 : i32
    %c0_i32_1 = arith.constant 0 : i32
    return %c0_i32, %c0_i32_0 : i32, i32
  }
  func.func @transform_5(%arg0: i32) -> (i32, i32) {
    %c0_i32 = arith.constant 0 : i32
    %c0_i32_0 = arith.constant 0 : i32
    return %arg0, %c0_i32 : i32, i32
  }
}

</mosaic_0001>

<bundles_post_ra>
// kernel: tpu_custom_call.1
= control target key start
LH: loop header
LB: loop body
LE: loop exit
PB: predicated region body
PF: predicated region fallthrough
CT: control target
= control target key end

     0   :  { %10 = vsyncpa [#allocation3], 0  ;;  %s1036_s0 = inlined_call_operand.hbm [shape: f32[4,128,128], index: 0, kind: input, shape index: {}]   ;;  %s1037_s1 = inlined_call_operand.vmem [shape: f32[1,128], index: 1, kind: input, shape index: {}]   ;;  %s1038_s2 = inlined_call_operand.vmem [shape: f32[1,128], index: 2, kind: input, shape index: {}]   ;;  %s1039_s3 = inlined_call_operand.hbm [shape: f32[128,128], index: 3, kind: input, shape index: {}]   ;;  %s1040_s4 = inlined_call_operand.vmem [shape: f32[1,128], index: 4, kind: input, shape index: {}]   ;;  %s1041_s5 = inlined_call_operand.hbm [shape: f32[128,128], index: 5, kind: output, shape index: {}]  }
   0x1   :  { %11 = vsyncpa [#allocation6], 0 }
   0x2   :  { %12 = vsyncpa [#allocation4], 0  ;;  %s788_s18 = smov [#allocation2]   ;;  %s716_s22 = scalar_lea.hbm %s1036_s0, 8192 }
   0x3   :  { %s18_s19 = sshll.u32 %s788_s18, 4  ;;  %p717_p0 = scmp.ne.s32.totalorder %s1036_s0, %s716_s22  ;;  %s19_s19 = int_to_ptr.vmem [resolvable:$true] %s18_s19 }
   0x4   :  { %p720_p1 = scmp.lt.u32.totalorder %s716_s22, %s1036_s0 }
   0x6   :  { %p722_p2 = pnand %p720_p1, %p717_p0 }
   0x8   :  { %725 = shalt.err (!%p722_p2)
}
   0x9   :  { %s726_s27 = scalar_lea.vmem %s19_s19, 8192  ;;  %p731_p4 = scmp.lt.s32.totalorder %s19_s19, %s19_s19 }
   0xa   :  { %p727_p3 = scmp.ne.s32.totalorder %s19_s19, %s726_s27  ;;  %p732_p5 = scmp.lt.s32.totalorder %s726_s27, %s726_s27 }
   0xc   :  { %p733_p6 = por %p732_p5, %p731_p4 }
   0xe   :  { %p734_p7 = pnand %p733_p6, %p727_p3 }
  0x10   :  { %737 = shalt.err (!%p734_p7)
}
  0x11   :  { %s789_s28 = smov 128   ;;  %s790_s29 = smov 8  }
  0x12   :  { %24 = dma.hbm_to_vmem [thread:$0]  %s1036_s0, 8192, %s19_s19, [#allocation3], %s789_s28, %s789_s28, %s790_s29  }
  0x13   :  { %s791_s7 = smov [#allocation5]   ;;  %s738_s11 = scalar_lea.hbm %s1039_s3, 2048 }
  0x14   :  { %s34_s8 = sshll.u32 %s791_s7, 4  ;;  %p739_p8 = scmp.ne.s32.totalorder %s1039_s3, %s738_s11  ;;  %s35_s8 = int_to_ptr.vmem [resolvable:$true] %s34_s8 }
  0x15   :  { %p742_p9 = scmp.lt.u32.totalorder %s738_s11, %s1039_s3 }
  0x17   :  { %p744_p10 = pnand %p742_p9, %p739_p8 }
  0x19   :  { %747 = shalt.err (!%p744_p10)
}
  0x1a   :  { %s748_s16 = scalar_lea.vmem %s35_s8, 2048  ;;  %p753_p12 = scmp.lt.s32.totalorder %s35_s8, %s35_s8 }
  0x1b   :  { %p749_p11 = scmp.ne.s32.totalorder %s35_s8, %s748_s16  ;;  %p754_p13 = scmp.lt.s32.totalorder %s748_s16, %s748_s16 }
  0x1d   :  { %p755_p0 = por %p754_p13, %p753_p12 }
  0x1f   :  { %p756_p1 = pnand %p755_p0, %p749_p11 }
  0x21   :  { %759 = shalt.err (!%p756_p1)
}
  0x22   :  { %40 = dma.hbm_to_vmem [thread:$0]  %s1039_s3, 2048, %s35_s8, [#allocation6], %s789_s28, %s789_s28, %s790_s29  }
  0x23   :  { %782 = dma.done.wait [#allocation3], 8192  }
  0x24   :  { %783 = vsyncadd [#allocation3], 4294959104 }
  0x25   :  { %784 = dma.done.wait [#allocation6], 2048  }
  0x26   :  { %785 = vsyncadd [#allocation6], 4294965248  ;;  %v370_v0 = vld [vmem:[#allocation5] sm:$0xff]  ;;  %v371_v1 = vld [vmem:[#allocation5 + $0x8] sm:$0xff] }
  0x27   :  { %v372_v2 = vld [vmem:[#allocation5 + $0x10] sm:$0xff]  ;;  %v663_v3 = vpack.c.bf16 %v371_v1, %v370_v0  ;;  %v373_v4 = vld [vmem:[#allocation5 + $0x18] sm:$0xff]  ;;  %v374_v5 = vld [vmem:[#allocation5 + $0x20] sm:$0xff] }
  0x28   :  { %v375_v6 = vld [vmem:[#allocation5 + $0x28] sm:$0xff]  ;;  %v667_v7 = vpack.c.bf16 %v373_v4, %v372_v2  ;;  %v376_v8 = vld [vmem:[#allocation5 + $0x30] sm:$0xff]  ;;  %v377_v9 = vld [vmem:[#allocation5 + $0x38] sm:$0xff] }
  0x29   :  { %v378_v10 = vld [vmem:[#allocation5 + $0x40] sm:$0xff]  ;;  %664 = vmatprep.subr.bf16.mxu0 %v663_v3  ;;  %695 = vmatprep.subr.bf16.mxu1 %v663_v3  ;;  %v379_v11 = vld [vmem:[#allocation5 + $0x48] sm:$0xff]  ;;  %v380_v12 = vld [vmem:[#allocation5 + $0x50] sm:$0xff]  ;;  %v671_v17 = vpack.c.bf16 %v375_v6, %v374_v5  ;;  %v675_v21 = vpack.c.bf16 %v377_v9, %v376_v8 }
  0x2a   :  { %v381_v13 = vld [vmem:[#allocation5 + $0x58] sm:$0xff]  ;;  %666 = vmatpush3.bf16.msra.mxu0 %v663_v3  ;;  %703 = vmatpush3.bf16.msra.mxu1 %v663_v3  ;;  %v382_v14 = vld [vmem:[#allocation5 + $0x60] sm:$0xff]  ;;  %v383_v15 = vld [vmem:[#allocation5 + $0x68] sm:$0xff]  ;;  %v863_v22 = vpack.c.bf16 %v379_v11, %v378_v10 }
  0x2b   :  { %v384_v16 = vld [vmem:[#allocation5 + $0x70] sm:$0xff]  ;;  %668 = vmatprep.subr.bf16.mxu0 %v667_v7  ;;  %696 = vmatprep.subr.bf16.mxu1 %v667_v7  ;;  %v385_v18 = vld [vmem:[#allocation5 + $0x78] sm:$0xff]  ;;  %v856_v19 = vld [vmem:[%s1037_s1] ss:$0 sm:$0xff]  ;;  %v865_v23 = vpack.c.bf16 %v381_v13, %v380_v12  ;;  %v867_v24 = vpack.c.bf16 %v383_v15, %v382_v14 }
  0x2c   :  { %v861_v20 = vld [vmem:[%s1038_s2] ss:$0 sm:$0xff]  ;;  %v869_v28 = vpack.c.bf16 %v385_v18, %v384_v16  ;;  %v52_v47 = vld [vmem:[#allocation2 + $0x8] sm:$0xff] }
  0x2d   :  { %v51_v25 = vld [vmem:[#allocation2] sm:$0xff]  ;;  %v129_v52 = vld [vmem:[#allocation2 + $0x88] sm:$0xff]  ;;  %v74_v61 = vmul.f32 %v856_v19, %v52_v47 }
  0x2e   :  { %v128_v26 = vld [vmem:[#allocation2 + $0x80] sm:$0xff]  ;;  %v73_v29 = vmul.f32 %v856_v19, %v51_v25  ;;  %670 = vmatpush3.bf16.msra.mxu0 %v667_v7  ;;  %704 = vmatpush3.bf16.msra.mxu1 %v667_v7  ;;  %v210_v57 = vld [vmem:[#allocation2 + $0x108] sm:$0xff]  ;;  %v145_v2 = vmul.f32 %v856_v19, %v129_v52 }
  0x2f   :  { %v209_v27 = vld [vmem:[#allocation2 + $0x100] sm:$0xff]  ;;  %v144_v30 = vmul.f32 %v856_v19, %v128_v26  ;;  %672 = vmatprep.subr.bf16.mxu0 %v671_v17  ;;  %697 = vmatprep.subr.bf16.mxu1 %v671_v17  ;;  %v275_v58 = vld [vmem:[#allocation2 + $0x188] sm:$0xff]  ;;  %v96_v4 = vadd.f32 %v861_v20, %v74_v61  ;;  %v226_v5 = vmul.f32 %v856_v19, %v210_v57  ;;  %v53_v26 = vld [vmem:[#allocation2 + $0x10] sm:$0xff] }
  0x30   :  { %v225_v31 = vmul.f32 %v856_v19, %v209_v27  ;;  %v274_v32 = vld [vmem:[#allocation2 + $0x180] sm:$0xff]  ;;  %v95_v40 = vadd.f32 %v861_v20, %v73_v29  ;;  %v60_v62 = vld [vmem:[#allocation2 + $0x48] sm:$0xff]  ;;  %v291_v6 = vmul.f32 %v856_v19, %v275_v58  ;;  %v161_v10 = vadd.f32 %v861_v20, %v145_v2 }
  0x31   :  { %v59_v33 = vld [vmem:[#allocation2 + $0x40] sm:$0xff]  ;;  %v290_v35 = vmul.f32 %v856_v19, %v274_v32  ;;  %v160_v41 = vadd.f32 %v861_v20, %v144_v30  ;;  %v137_v7 = vld [vmem:[#allocation2 + $0xc8] sm:$0xff]  ;;  %v82_v11 = vmul.f32 %v856_v19, %v60_v62  ;;  %v112_v14 = vmax.f32 %v96_v4, 0.0  ;;  %v130_v32 = vld [vmem:[#allocation2 + $0x90] sm:$0xff] }
  0x32   :  { %v136_v34 = vld [vmem:[#allocation2 + $0xc0] sm:$0xff]  ;;  %v81_v36 = vmul.f32 %v856_v19, %v59_v33  ;;  %v241_v42 = vadd.f32 %v861_v20, %v225_v31  ;;  %v111_v48 = vmax.f32 %v95_v40, 0.0  ;;  %674 = vmatpush3.bf16.msra.mxu0 %v671_v17  ;;  %705 = vmatpush3.bf16.msra.mxu1 %v671_v17  ;;  %v218_v8 = vld [vmem:[#allocation2 + $0x148] sm:$0xff]  ;;  %v242_v15 = vadd.f32 %v861_v20, %v226_v5  ;;  %v211_v33 = vld [vmem:[#allocation2 + $0x110] sm:$0xff] }
  0x33   :  { %v152_v37 = vmul.f32 %v856_v19, %v136_v34  ;;  %v217_v38 = vld [vmem:[#allocation2 + $0x140] sm:$0xff]  ;;  %v306_v43 = vadd.f32 %v861_v20, %v290_v35  ;;  %v176_v49 = vmax.f32 %v160_v41, 0.0  ;;  %676 = vmatprep.subr.bf16.mxu0 %v675_v21  ;;  %698 = vmatprep.subr.bf16.mxu1 %v675_v21  ;;  %v283_v12 = vld [vmem:[#allocation2 + $0x1c8] sm:$0xff]  ;;  %v307_v16 = vadd.f32 %v861_v20, %v291_v6  ;;  %v131_v4 = vld [vmem:[#allocation2 + $0x98] sm:$0xff] }
  0x34   :  { %v282_v39 = vld [vmem:[#allocation2 + $0x1c0] sm:$0xff]  ;;  %v103_v44 = vadd.f32 %v861_v20, %v81_v36  ;;  %v233_v46 = vmul.f32 %v856_v19, %v217_v38  ;;  %v257_v50 = vmax.f32 %v241_v42, 0.0  ;;  %v177_v17 = vmax.f32 %v161_v10, 0.0  ;;  %v276_v38 = vld [vmem:[#allocation2 + $0x190] sm:$0xff]  ;;  %v212_v5 = vld [vmem:[#allocation2 + $0x118] sm:$0xff] }
  0x35   :  { %v168_v45 = vadd.f32 %v861_v20, %v152_v37  ;;  %v298_v51 = vmul.f32 %v856_v19, %v282_v39  ;;  %v322_v53 = vmax.f32 %v306_v43, 0.0  ;;  %v192_v59 = vadd.f32 %v176_v49, %v111_v48 }
  0x36   :  { %v119_v54 = vmax.f32 %v103_v44, 0.0  ;;  %v249_v56 = vadd.f32 %v861_v20, %v233_v46  ;;  %678 = vmatpush3.bf16.msra.mxu0 %v675_v21  ;;  %706 = vmatpush3.bf16.msra.mxu1 %v675_v21  ;;  %v104_v18 = vadd.f32 %v861_v20, %v82_v11  ;;  %v153_v21 = vmul.f32 %v856_v19, %v137_v7 }
  0x37   :  { %v184_v55 = vmax.f32 %v168_v45, 0.0  ;;  %v314_v60 = vadd.f32 %v861_v20, %v298_v51  ;;  %v338_v63 = vadd.f32 %v322_v53, %v257_v50  ;;  %680 = vmatprep.subr.bf16.mxu0 %v863_v22  ;;  %699 = vmatprep.subr.bf16.mxu1 %v863_v22  ;;  %v234_v25 = vmul.f32 %v856_v19, %v218_v8  ;;  %v61_v45 = vld [vmem:[#allocation2 + $0x50] sm:$0xff] }
  0x38   :  { %v265_v1 = vmax.f32 %v249_v56, 0.0  ;;  %v258_v29 = vmax.f32 %v242_v15, 0.0  ;;  %v323_v30 = vmax.f32 %v307_v16, 0.0  ;;  %v299_v31 = vmul.f32 %v856_v19, %v283_v12  ;;  %v138_v50 = vld [vmem:[#allocation2 + $0xd0] sm:$0xff] }
  0x39   :  { %v200_v0 = vadd.f32 %v184_v55, %v119_v54  ;;  %v330_v3 = vmax.f32 %v314_v60, 0.0  ;;  %v354_v9 = vadd.f32 %v338_v63, %v192_v59  ;;  %v193_v34 = vadd.f32 %v177_v17, %v112_v14  ;;  %v219_v51 = vld [vmem:[#allocation2 + $0x150] sm:$0xff]  ;;  %v54_v63 = vld [vmem:[#allocation2 + $0x18] sm:$0xff] }
  0x3a   :  { %682 = vmatpush3.bf16.msra.mxu0 %v863_v22  ;;  %707 = vmatpush3.bf16.msra.mxu1 %v863_v22  ;;  %v120_v35 = vmax.f32 %v104_v18, 0.0  ;;  %v169_v36 = vadd.f32 %v861_v20, %v153_v21  ;;  %v250_v37 = vadd.f32 %v861_v20, %v234_v25  ;;  %v339_v39 = vadd.f32 %v323_v30, %v258_v29  ;;  %v284_v55 = vld [vmem:[#allocation2 + $0x1d0] sm:$0xff]  ;;  %v62_v17 = vld [vmem:[#allocation2 + $0x58] sm:$0xff] }
  0x3b   :  { %v346_v13 = vadd.f32 %v330_v3, %v265_v1  ;;  %639 = vmatprep.mubr.f32.mxu0 %v354_v9  ;;  %684 = vmatprep.subr.bf16.mxu0 %v865_v23  ;;  %v315_v40 = vadd.f32 %v861_v20, %v299_v31  ;;  %v75_v41 = vmul.f32 %v856_v19, %v53_v26  ;;  %v277_v9 = vld [vmem:[#allocation2 + $0x198] sm:$0xff] }
  0x3c   :  { %700 = vmatprep.subr.bf16.mxu1 %v865_v23  ;;  %v185_v42 = vmax.f32 %v169_v36, 0.0  ;;  %v266_v43 = vmax.f32 %v250_v37, 0.0  ;;  %v146_v22 = vmul.f32 %v856_v19, %v130_v32  ;;  %v227_v44 = vmul.f32 %v856_v19, %v211_v33  ;;  %v220_v29 = vld [vmem:[#allocation2 + $0x158] sm:$0xff] }
  0x3d   :  { %v362_v27 = vadd.f32 %v346_v13, %v200_v0  ;;  %v912_v46 = vadd.f32 %v339_v39, %v193_v34  ;;  %v331_v47 = vmax.f32 %v315_v40, 0.0  ;;  %v97_v48 = vadd.f32 %v861_v20, %v75_v41  ;;  %v285_v33 = vld [vmem:[#allocation2 + $0x1d8] sm:$0xff] }
  0x3e   :  { %v292_v49 = vmul.f32 %v856_v19, %v276_v38  ;;  %686 = vmatpush3.bf16.msra.mxu0 %v865_v23  ;;  %708 = vmatpush3.bf16.msra.mxu1 %v865_v23  ;;  %v201_v52 = vadd.f32 %v185_v42, %v120_v35  ;;  %v162_v53 = vadd.f32 %v861_v20, %v146_v22  ;;  %v55_v38 = vld [vmem:[#allocation2 + $0x20] sm:$0xff] }
  0x3f   :  { %651 = vmatprep.mubr.f32.mxu1 %v362_v27  ;;  %v243_v54 = vadd.f32 %v861_v20, %v227_v44  ;;  %688 = vmatprep.subr.bf16.mxu0 %v867_v24  ;;  %v347_v56 = vadd.f32 %v331_v47, %v266_v43  ;;  %v113_v57 = vmax.f32 %v97_v48, 0.0  ;;  %v83_v59 = vmul.f32 %v856_v19, %v61_v45  ;;  %v139_v27 = vld [vmem:[#allocation2 + $0xd8] sm:$0xff]  ;;  %v213_v47 = vld [vmem:[#allocation2 + $0x120] sm:$0xff] }
  0x40   :  { %701 = vmatprep.subr.bf16.mxu1 %v867_v24  ;;  %v308_v58 = vadd.f32 %v861_v20, %v292_v49  ;;  %v178_v60 = vmax.f32 %v162_v53, 0.0  ;;  %v154_v23 = vmul.f32 %v856_v19, %v138_v50  ;;  %v235_v62 = vmul.f32 %v856_v19, %v219_v51 }
  0x41   :  { %v259_v61 = vmax.f32 %v243_v54, 0.0  ;;  %v363_v0 = vadd.f32 %v347_v56, %v201_v52  ;;  %v105_v2 = vadd.f32 %v861_v20, %v83_v59  ;;  %v300_v3 = vmul.f32 %v856_v19, %v284_v55  ;;  %v278_v52 = vld [vmem:[#allocation2 + $0x1a0] sm:$0xff] }
  0x42   :  { %v324_v1 = vmax.f32 %v308_v58, 0.0  ;;  %690 = vmatpush3.bf16.msra.mxu0 %v867_v24  ;;  %709 = vmatpush3.bf16.msra.mxu1 %v867_v24  ;;  %v194_v6 = vadd.f32 %v178_v60, %v113_v57  ;;  %v170_v7 = vadd.f32 %v861_v20, %v154_v23  ;;  %v251_v8 = vadd.f32 %v861_v20, %v235_v62  ;;  %v63_v56 = vld [vmem:[#allocation2 + $0x60] sm:$0xff] }
  0x43   :  { %692 = vmatprep.subr.bf16.mxu0 %v869_v28  ;;  %702 = vmatprep.subr.bf16.mxu1 %v869_v28  ;;  %v121_v11 = vmax.f32 %v105_v2, 0.0  ;;  %v316_v12 = vadd.f32 %v861_v20, %v300_v3  ;;  %v76_v13 = vmul.f32 %v856_v19, %v54_v63  ;;  %v147_v24 = vmul.f32 %v856_v19, %v131_v4  ;;  %v286_v2 = vld [vmem:[#allocation2 + $0x1e0] sm:$0xff] }
  0x44   :  { %v340_v10 = vadd.f32 %v324_v1, %v259_v61  ;;  %v186_v14 = vmax.f32 %v170_v7, 0.0  ;;  %v267_v15 = vmax.f32 %v251_v8, 0.0  ;;  %v228_v16 = vmul.f32 %v856_v19, %v212_v5  ;;  %v140_v61 = vld [vmem:[#allocation2 + $0xe0] sm:$0xff] }
  0x45   :  { %v332_v21 = vmax.f32 %v316_v12, 0.0  ;;  %v98_v25 = vadd.f32 %v861_v20, %v76_v13  ;;  %v293_v26 = vmul.f32 %v856_v19, %v277_v9  ;;  %v163_v31 = vadd.f32 %v861_v20, %v147_v24  ;;  %v221_v1 = vld [vmem:[#allocation2 + $0x160] sm:$0xff]  ;;  %v133_v24 = vld [vmem:[#allocation2 + $0xa8] sm:$0xff] }
  0x46   :  { %v356_v18 = vadd.f32 %v340_v10, %v194_v6  ;;  %694 = vmatpush3.bf16.msra.mxu0 %v869_v28  ;;  %710 = vmatpush3.bf16.msra.mxu1 %v869_v28  ;;  %v202_v30 = vadd.f32 %v186_v14, %v121_v11  ;;  %v244_v32 = vadd.f32 %v861_v20, %v228_v16  ;;  %v132_v28 = vld [vmem:[#allocation2 + $0xa0] sm:$0xff]  ;;  %v56_v11 = vld [vmem:[#allocation2 + $0x28] sm:$0xff] }
  0x47   :  { %v348_v34 = vadd.f32 %v332_v21, %v267_v15  ;;  %v114_v35 = vmax.f32 %v98_v25, 0.0  ;;  %v309_v36 = vadd.f32 %v861_v20, %v293_v26  ;;  %v84_v37 = vmul.f32 %v856_v19, %v62_v17  ;;  %v214_v16 = vld [vmem:[#allocation2 + $0x128] sm:$0xff] }
  0x48   :  { %v179_v39 = vmax.f32 %v163_v31, 0.0  ;;  %v260_v40 = vmax.f32 %v244_v32, 0.0  ;;  %v155_v41 = vmul.f32 %v856_v19, %v139_v27  ;;  %v236_v42 = vmul.f32 %v856_v19, %v220_v29  ;;  %v279_v26 = vld [vmem:[#allocation2 + $0x1a8] sm:$0xff] }
  0x49   :  { %640 = vmatmul.mubr.f32.vlgmr.msra.gmra.mrb[0].mxu0 %v912_v46  ;;  %652 = vmatmul.mubr.f32.vlgmr.msra.gmra.mrb[0].mxu1 %v363_v0  ;;  %v364_v43 = vadd.f32 %v348_v34, %v202_v30  ;;  %v325_v22 = vmax.f32 %v309_v36, 0.0  ;;  %v106_v44 = vadd.f32 %v861_v20, %v84_v37  ;;  %v301_v45 = vmul.f32 %v856_v19, %v285_v33  ;;  %v64_v36 = vld [vmem:[#allocation2 + $0x68] sm:$0xff] }
  0x4a   :  { %642 = vmatprep.mubr.f32.mxu0 %v356_v18  ;;  %v195_v48 = vadd.f32 %v179_v39, %v114_v35  ;;  %v171_v49 = vadd.f32 %v861_v20, %v155_v41  ;;  %v252_v50 = vadd.f32 %v861_v20, %v236_v42  ;;  %v77_v51 = vmul.f32 %v856_v19, %v55_v38  ;;  %v141_v41 = vld [vmem:[#allocation2 + $0xe8] sm:$0xff] }
  0x4b   :  { %654 = vmatprep.mubr.f32.mxu1 %v364_v43  ;;  %v341_v53 = vadd.f32 %v325_v22, %v260_v40  ;;  %v122_v46 = vmax.f32 %v106_v44, 0.0  ;;  %v317_v54 = vadd.f32 %v861_v20, %v301_v45  ;;  %v148_v55 = vmul.f32 %v856_v19, %v132_v28  ;;  %v222_v42 = vld [vmem:[#allocation2 + $0x168] sm:$0xff] }
  0x4c   :  { %v187_v57 = vmax.f32 %v171_v49, 0.0  ;;  %v268_v58 = vmax.f32 %v252_v50, 0.0  ;;  %v99_v59 = vadd.f32 %v861_v20, %v77_v51  ;;  %v229_v60 = vmul.f32 %v856_v19, %v213_v47  ;;  %v287_v45 = vld [vmem:[#allocation2 + $0x1e8] sm:$0xff]  ;;  %v57_v51 = vld [vmem:[#allocation2 + $0x30] sm:$0xff] }
  0x4d   :  { %v357_v23 = vadd.f32 %v341_v53, %v195_v48  ;;  %v333_v62 = vmax.f32 %v317_v54, 0.0  ;;  %v164_v63 = vadd.f32 %v861_v20, %v148_v55  ;;  %v294_v0 = vmul.f32 %v856_v19, %v278_v52  ;;  %v134_v55 = vld [vmem:[#allocation2 + $0xb0] sm:$0xff] }
  0x4e   :  { %v203_v3 = vadd.f32 %v187_v57, %v122_v46  ;;  %v115_v4 = vmax.f32 %v99_v59, 0.0  ;;  %v245_v5 = vadd.f32 %v861_v20, %v229_v60  ;;  %v85_v6 = vmul.f32 %v856_v19, %v63_v56  ;;  %v215_v60 = vld [vmem:[#allocation2 + $0x130] sm:$0xff] }
  0x4f   :  { %643 = vmatmul.mubr.f32.gmra.mrb[2].mxu0 %v357_v23  ;;  %v349_v7 = vadd.f32 %v333_v62, %v268_v58  ;;  %v180_v8 = vmax.f32 %v164_v63, 0.0  ;;  %v310_v9 = vadd.f32 %v861_v20, %v294_v0  ;;  %v156_v10 = vmul.f32 %v856_v19, %v140_v61  ;;  %v280_v0 = vld [vmem:[#allocation2 + $0x1b0] sm:$0xff] }
  0x50   :  { %v261_v12 = vmax.f32 %v245_v5, 0.0  ;;  %v107_v13 = vadd.f32 %v861_v20, %v85_v6  ;;  %v237_v14 = vmul.f32 %v856_v19, %v221_v1  ;;  %v302_v15 = vmul.f32 %v856_v19, %v286_v2  ;;  %v65_v5 = vld [vmem:[#allocation2 + $0x70] sm:$0xff] }
  0x51   :  { %v365_v17 = vadd.f32 %v349_v7, %v203_v3  ;;  %v196_v18 = vadd.f32 %v180_v8, %v115_v4  ;;  %v326_v21 = vmax.f32 %v310_v9, 0.0  ;;  %v172_v25 = vadd.f32 %v861_v20, %v156_v10  ;;  %v142_v10 = vld [vmem:[#allocation2 + $0xf0] sm:$0xff] }
  0x52   :  { %v123_v27 = vmax.f32 %v107_v13, 0.0  ;;  %v253_v29 = vadd.f32 %v861_v20, %v237_v14  ;;  %v318_v30 = vadd.f32 %v861_v20, %v302_v15  ;;  %v78_v31 = vmul.f32 %v856_v19, %v56_v11  ;;  %v223_v15 = vld [vmem:[#allocation2 + $0x170] sm:$0xff] }
  0x53   :  { %655 = vmatmul.mubr.f32.gmra.mrb[2].mxu1 %v365_v17  ;;  %v342_v32 = vadd.f32 %v326_v21, %v261_v12  ;;  %v188_v33 = vmax.f32 %v172_v25, 0.0  ;;  %v149_v34 = vmul.f32 %v856_v19, %v133_v24  ;;  %v230_v35 = vmul.f32 %v856_v19, %v214_v16  ;;  %v288_v24 = vld [vmem:[#allocation2 + $0x1f0] sm:$0xff] }
  0x54   :  { %v269_v37 = vmax.f32 %v253_v29, 0.0  ;;  %v334_v38 = vmax.f32 %v318_v30, 0.0  ;;  %v100_v39 = vadd.f32 %v861_v20, %v78_v31  ;;  %v295_v40 = vmul.f32 %v856_v19, %v279_v26  ;;  %v58_v30 = vld [vmem:[#allocation2 + $0x38] sm:$0xff] }
  0x55   :  { %v358_v28 = vadd.f32 %v342_v32, %v196_v18  ;;  %v204_v43 = vadd.f32 %v188_v33, %v123_v27  ;;  %v165_v22 = vadd.f32 %v861_v20, %v149_v34  ;;  %v246_v44 = vadd.f32 %v861_v20, %v230_v35  ;;  %v135_v35 = vld [vmem:[#allocation2 + $0xb8] sm:$0xff] }
  0x56   :  { %v350_v47 = vadd.f32 %v334_v38, %v269_v37  ;;  %v116_v48 = vmax.f32 %v100_v39, 0.0  ;;  %v311_v49 = vadd.f32 %v861_v20, %v295_v40  ;;  %v86_v50 = vmul.f32 %v856_v19, %v64_v36  ;;  %v216_v36 = vld [vmem:[#allocation2 + $0x138] sm:$0xff] }
  0x57   :  { %645 = vmatprep.mubr.f32.mxu0 %v358_v28  ;;  %v181_v52 = vmax.f32 %v165_v22, 0.0  ;;  %v262_v53 = vmax.f32 %v246_v44, 0.0  ;;  %v157_v46 = vmul.f32 %v856_v19, %v141_v41  ;;  %v238_v54 = vmul.f32 %v856_v19, %v222_v42  ;;  %v281_v41 = vld [vmem:[#allocation2 + $0x1b8] sm:$0xff] }
  0x58   :  { %v366_v56 = vadd.f32 %v350_v47, %v204_v43  ;;  %v327_v57 = vmax.f32 %v311_v49, 0.0  ;;  %v108_v58 = vadd.f32 %v861_v20, %v86_v50  ;;  %v303_v59 = vmul.f32 %v856_v19, %v287_v45  ;;  %v66_v49 = vld [vmem:[#allocation2 + $0x78] sm:$0xff] }
  0x59   :  { %v197_v61 = vadd.f32 %v181_v52, %v116_v48  ;;  %v173_v23 = vadd.f32 %v861_v20, %v157_v46  ;;  %v254_v62 = vadd.f32 %v861_v20, %v238_v54  ;;  %v79_v63 = vmul.f32 %v856_v19, %v57_v51  ;;  %v143_v46 = vld [vmem:[#allocation2 + $0xf8] sm:$0xff] }
  0x5a   :  { %657 = vmatprep.mubr.f32.mxu1 %v366_v56  ;;  %v343_v1 = vadd.f32 %v327_v57, %v262_v53  ;;  %v124_v2 = vmax.f32 %v108_v58, 0.0  ;;  %v319_v3 = vadd.f32 %v861_v20, %v303_v59  ;;  %v150_v4 = vmul.f32 %v856_v19, %v134_v55  ;;  %v224_v54 = vld [vmem:[#allocation2 + $0x178] sm:$0xff] }
  0x5b   :  { %v189_v6 = vmax.f32 %v173_v23, 0.0  ;;  %v270_v7 = vmax.f32 %v254_v62, 0.0  ;;  %v101_v8 = vadd.f32 %v861_v20, %v79_v63  ;;  %v231_v9 = vmul.f32 %v856_v19, %v215_v60  ;;  %v289_v59 = vld [vmem:[#allocation2 + $0x1f8] sm:$0xff] }
  0x5c   :  { %v359_v11 = vadd.f32 %v343_v1, %v197_v61  ;;  %v335_v12 = vmax.f32 %v319_v3, 0.0  ;;  %v166_v13 = vadd.f32 %v861_v20, %v150_v4  ;;  %v296_v14 = vmul.f32 %v856_v19, %v280_v0 }
  0x5d   :  { %v205_v16 = vadd.f32 %v189_v6, %v124_v2  ;;  %v117_v17 = vmax.f32 %v101_v8, 0.0  ;;  %v247_v18 = vadd.f32 %v861_v20, %v231_v9  ;;  %v87_v21 = vmul.f32 %v856_v19, %v65_v5 }
  0x5e   :  { %646 = vmatmul.mubr.f32.gmra.mrb[4].mxu0 %v359_v11  ;;  %v351_v25 = vadd.f32 %v335_v12, %v270_v7  ;;  %v182_v26 = vmax.f32 %v166_v13, 0.0  ;;  %v312_v27 = vadd.f32 %v861_v20, %v296_v14  ;;  %v158_v29 = vmul.f32 %v856_v19, %v142_v10 }
  0x5f   :  { %v263_v31 = vmax.f32 %v247_v18, 0.0  ;;  %v109_v32 = vadd.f32 %v861_v20, %v87_v21  ;;  %v239_v33 = vmul.f32 %v856_v19, %v223_v15  ;;  %v304_v34 = vmul.f32 %v856_v19, %v288_v24 }
  0x60   :  { %v367_v37 = vadd.f32 %v351_v25, %v205_v16  ;;  %v198_v38 = vadd.f32 %v182_v26, %v117_v17  ;;  %v328_v39 = vmax.f32 %v312_v27, 0.0  ;;  %v174_v40 = vadd.f32 %v861_v20, %v158_v29 }
  0x61   :  { %v125_v42 = vmax.f32 %v109_v32, 0.0  ;;  %v255_v28 = vadd.f32 %v861_v20, %v239_v33  ;;  %v320_v43 = vadd.f32 %v861_v20, %v304_v34  ;;  %v80_v22 = vmul.f32 %v856_v19, %v58_v30 }
  0x62   :  { %658 = vmatmul.mubr.f32.gmra.mrb[4].mxu1 %v367_v37  ;;  %v344_v44 = vadd.f32 %v328_v39, %v263_v31  ;;  %v190_v45 = vmax.f32 %v174_v40, 0.0  ;;  %v151_v47 = vmul.f32 %v856_v19, %v135_v35  ;;  %v232_v48 = vmul.f32 %v856_v19, %v216_v36 }
  0x63   :  { %v271_v50 = vmax.f32 %v255_v28, 0.0  ;;  %v336_v51 = vmax.f32 %v320_v43, 0.0  ;;  %v102_v52 = vadd.f32 %v861_v20, %v80_v22  ;;  %v297_v53 = vmul.f32 %v856_v19, %v281_v41 }
  0x64   :  { %v360_v55 = vadd.f32 %v344_v44, %v198_v38  ;;  %v206_v56 = vadd.f32 %v190_v45, %v125_v42  ;;  %v167_v57 = vadd.f32 %v861_v20, %v151_v47  ;;  %v248_v58 = vadd.f32 %v861_v20, %v232_v48 }
  0x65   :  { %v352_v60 = vadd.f32 %v336_v51, %v271_v50  ;;  %v118_v61 = vmax.f32 %v102_v52, 0.0  ;;  %v313_v23 = vadd.f32 %v861_v20, %v297_v53  ;;  %v88_v62 = vmul.f32 %v856_v19, %v66_v49 }
  0x66   :  { %648 = vmatprep.mubr.f32.mxu0 %v360_v55  ;;  %v183_v63 = vmax.f32 %v167_v57, 0.0  ;;  %v264_v0 = vmax.f32 %v248_v58, 0.0  ;;  %v159_v1 = vmul.f32 %v856_v19, %v143_v46  ;;  %v240_v2 = vmul.f32 %v856_v19, %v224_v54 }
  0x67   :  { %v368_v3 = vadd.f32 %v352_v60, %v206_v56  ;;  %v329_v4 = vmax.f32 %v313_v23, 0.0  ;;  %v110_v5 = vadd.f32 %v861_v20, %v88_v62  ;;  %v305_v6 = vmul.f32 %v856_v19, %v289_v59  ;;  %v574_v19 = vld [vmem:[%s1040_s4] ss:$0 sm:$0xff]  ;;  %s792_s4 = smov [#allocation7]  }
  0x68   :  { %v199_v7 = vadd.f32 %v183_v63, %v118_v61  ;;  %v175_v8 = vadd.f32 %v861_v20, %v159_v1  ;;  %v256_v9 = vadd.f32 %v861_v20, %v240_v2  ;;  %s559_s21 = sshll.u32 %s792_s4, 4  ;;  %s560_s21 = int_to_ptr.vmem [resolvable:$true] %s559_s21 }
  0x69   :  { %660 = vmatprep.mubr.f32.mxu1 %v368_v3  ;;  %v345_v10 = vadd.f32 %v329_v4, %v264_v0  ;;  %v126_v11 = vmax.f32 %v110_v5, 0.0  ;;  %v321_v12 = vadd.f32 %v861_v20, %v305_v6  ;;  %s760_s22 = scalar_lea.vmem %s560_s21, 2048  ;;  %p765_p3 = scmp.lt.s32.totalorder %s560_s21, %s560_s21 }
  0x6a   :  { %v191_v13 = vmax.f32 %v175_v8, 0.0  ;;  %v272_v14 = vmax.f32 %v256_v9, 0.0  ;;  %p761_p2 = scmp.ne.s32.totalorder %s560_s21, %s760_s22  ;;  %p766_p4 = scmp.lt.s32.totalorder %s760_s22, %s760_s22 }
  0x6b   :  { %v361_v15 = vadd.f32 %v345_v10, %v199_v7  ;;  %v337_v24 = vmax.f32 %v321_v12, 0.0 }
  0x6c   :  { %v207_v16 = vadd.f32 %v191_v13, %v126_v11  ;;  %p767_p5 = por %p766_p4, %p765_p3 }
  0x6d   :  { %649 = vmatmul.mubr.f32.gmra.mrb[6].mxu0 %v361_v15  ;;  %v353_v17 = vadd.f32 %v337_v24, %v272_v14 }
  0x6e   :  { %p768_p6 = pnand %p767_p5, %p761_p2 }
  0x6f   :  { %v369_v18 = vadd.f32 %v353_v17, %v207_v16 }
  0x71   :  { %661 = vmatmul.mubr.f32.gmra.mrb[6].mxu1 %v369_v18 }
 0x11c   :  { %v641_v21 = vpop.f32.mrb[0].mxu0  ;;  %v653_v25 = vpop.f32.mrb[0].mxu1 }
 0x11d   :  { %v465_v26 = vadd.f32 %v641_v21, %v574_v19  ;;  %v505_v27 = vadd.f32 %v653_v25, %v574_v19  ;;  %v459_v29 = vpop.f32.mrb[1].mxu0  ;;  %v499_v30 = vpop.f32.mrb[1].mxu1 }
 0x11e   :  { %v460_v20 = vadd.f32 %v574_v19, %v459_v29  ;;  %v500_v31 = vadd.f32 %v574_v19, %v499_v30 }
 0x11f   :  { %539 = vst [vmem:[#allocation7 + $0x8] sm:$0xff] %v465_v26  ;;  %547 = vst [vmem:[#allocation7 + $0x48] sm:$0xff] %v505_v27 }
 0x120   :  { %538 = vst [vmem:[#allocation7] sm:$0xff] %v460_v20  ;;  %546 = vst [vmem:[#allocation7 + $0x40] sm:$0xff] %v500_v31 }
 0x122   :  { %v644_v32 = vpop.f32.mrb[2].mxu0 }
 0x123   :  { %v475_v33 = vadd.f32 %v644_v32, %v574_v19  ;;  %v469_v34 = vpop.f32.mrb[3].mxu0 }
 0x124   :  { %v470_v35 = vadd.f32 %v574_v19, %v469_v34 }
 0x125   :  { %541 = vst [vmem:[#allocation7 + $0x18] sm:$0xff] %v475_v33 }
 0x126   :  { %v656_v36 = vpop.f32.mrb[2].mxu1  ;;  %540 = vst [vmem:[#allocation7 + $0x10] sm:$0xff] %v470_v35 }
 0x127   :  { %v515_v37 = vadd.f32 %v656_v36, %v574_v19  ;;  %v509_v38 = vpop.f32.mrb[3].mxu1 }
 0x128   :  { %v510_v39 = vadd.f32 %v574_v19, %v509_v38 }
 0x129   :  { %549 = vst [vmem:[#allocation7 + $0x58] sm:$0xff] %v515_v37 }
 0x12a   :  { %548 = vst [vmem:[#allocation7 + $0x50] sm:$0xff] %v510_v39 }
 0x131   :  { %v647_v40 = vpop.f32.mrb[4].mxu0 }
 0x132   :  { %v485_v41 = vadd.f32 %v647_v40, %v574_v19  ;;  %v479_v42 = vpop.f32.mrb[5].mxu0 }
 0x133   :  { %v480_v28 = vadd.f32 %v574_v19, %v479_v42 }
 0x134   :  { %543 = vst [vmem:[#allocation7 + $0x28] sm:$0xff] %v485_v41 }
 0x135   :  { %v659_v43 = vpop.f32.mrb[4].mxu1  ;;  %542 = vst [vmem:[#allocation7 + $0x20] sm:$0xff] %v480_v28 }
 0x136   :  { %v525_v22 = vadd.f32 %v659_v43, %v574_v19  ;;  %v519_v44 = vpop.f32.mrb[5].mxu1 }
 0x137   :  { %v520_v45 = vadd.f32 %v574_v19, %v519_v44 }
 0x138   :  { %551 = vst [vmem:[#allocation7 + $0x68] sm:$0xff] %v525_v22 }
 0x139   :  { %550 = vst [vmem:[#allocation7 + $0x60] sm:$0xff] %v520_v45 }
 0x140   :  { %v650_v47 = vpop.f32.mrb[6].mxu0 }
 0x141   :  { %v495_v48 = vadd.f32 %v650_v47, %v574_v19  ;;  %v489_v49 = vpop.f32.mrb[7].mxu0 }
 0x142   :  { %v490_v50 = vadd.f32 %v574_v19, %v489_v49 }
 0x143   :  { %545 = vst [vmem:[#allocation7 + $0x38] sm:$0xff] %v495_v48 }
 0x144   :  { %v662_v51 = vpop.f32.mrb[6].mxu1  ;;  %544 = vst [vmem:[#allocation7 + $0x30] sm:$0xff] %v490_v50 }
 0x145   :  { %v535_v52 = vadd.f32 %v662_v51, %v574_v19  ;;  %v529_v53 = vpop.f32.mrb[7].mxu1 }
 0x146   :  { %v530_v46 = vadd.f32 %v574_v19, %v529_v53 }
 0x147   :  { %553 = vst [vmem:[#allocation7 + $0x78] sm:$0xff] %v535_v52 }
 0x148   :  { %552 = vst [vmem:[#allocation7 + $0x70] sm:$0xff] %v530_v46 }
 0x149   :  { %771 = shalt.err (!%p768_p6)
}
 0x14a   :  { %s772_s25 = scalar_lea.hbm %s1041_s5, 2048 }
 0x14b   :  { %p773_p7 = scmp.ne.s32.totalorder %s1041_s5, %s772_s25  ;;  %p776_p8 = scmp.lt.u32.totalorder %s772_s25, %s1041_s5 }
 0x14d   :  { %p778_p9 = pnand %p776_p8, %p773_p7 }
 0x14f   :  { %781 = shalt.err (!%p778_p9)
}
 0x150   :  { %565 = dma.vmem_to_hbm [thread:$0]  %s560_s21, 2048, %s1041_s5, [#allocation4], %s789_s28, %s789_s28, %s790_s29  }
 0x151   :  { %786 = dma.done.wait [#allocation4], 2048  }
 0x152   :  { %787 = vsyncadd [#allocation4], 4294965248 }
 0x153   :  { %569 = vsyncpa [#allocation3], 1 }
 0x154   :  { %570 = vsyncpa [#allocation6], 1 }
 0x155   :  { %571 = vsyncpa [#allocation4], 1 }

</bundles_post_ra>
